<compile_context>
chip_gen: v7x
topology: tpu7x:2x2x1
jax: 0.10.0
libtpu: 0.0.40
codegen_flags: <defaults>
</compile_context>

<pallas_src>
import jax
import jax.numpy as jnp
from jax.experimental import pallas as pl
from jax.experimental.pallas import tpu as pltpu

# ---------------- configuration (small, deterministic) ----------------
NODE_DIM = 16      # node_dim
EDGE_DIM = 8       # edge_dim
HID      = 32      # hidden_dim_graph
FFN      = 64      # hidden_dim_ffn
L        = 2       # num_mp_layers
OUT      = 8       # out_channels
OUT_PAD  = 128     # lane-dense output width (sliced back to OUT in wrapper)
N_NODES  = 16
N_EDGES  = 32
N_GRAPHS = 2
BN_EPS   = 1e-5
JK_DIM   = HID * (L + 1)   # jk='cat'
ENC_K    = 32              # padded contraction dim for fused node/edge encoder

# ---- combined bf16 slab layout ([S_ROWS, 128]); all row offsets 16-aligned ----
SW       = 128
XE_OFF   = 0                                  # [N+E, ENC_K] block-diag x / e
G_OFF    = XE_OFF + N_NODES + N_EDGES         # 48  : G  [E, N] gather sources
S_OFF    = G_OFF + N_EDGES                    # 80  : St [N, E] scatter-add to tgt
P_OFF    = S_OFF + N_NODES                    # 96  : P  [B, N] mean pooling
WNE_OFF  = 112                                # [ENC_K, HID] stacked node/edge enc
W1_OFF   = WNE_OFF + ENC_K                    # 144 : L x mlp lin1 [HID, 2*HID]
W2_OFF   = W1_OFF + L * HID                   # 208 : L x mlp lin2 [2*HID, HID]
WR_OFF   = W2_OFF + L * 2 * HID               # 336 : readout [JK_DIM, FFN]
WO_OFF   = WR_OFF + JK_DIM                    # 432 : classifier [FFN, OUT->OUT_PAD]
S_ROWS   = WO_OFF + FFN                       # 496 (multiple of 16)

# ---- f32 aux slab layout ([A_ROWS, 128]): biases (BN folded) + (1+eps) rows ----
BN_ROW   = 0
BE_ROW   = 1
B1_ROW   = 2
B2_ROW   = 2 + L
BR_ROW   = 2 + 2 * L
BO_ROW   = 3 + 2 * L
EPS_ROW  = 4 + 2 * L          # L rows, each row = (1 + eps_l) broadcast
A_ROWS   = 16                 # 10 used, padded to f32 sublane tile


# ---------------------------- Pallas kernel ----------------------------
def gnn_kernel(s_ref,     # VMEM bf16 [S_ROWS, 128]  data + weights slab
               a_ref,     # VMEM f32  [A_ROWS, 128]  biases + (1+eps) rows
               out_ref):  # VMEM f32  [N_GRAPHS, OUT_PAD]
    f32, bf16 = jnp.float32, jnp.bfloat16

    def mm(a, b):  # bf16 MXU operands, f32 accumulation
        return jnp.dot(a.astype(bf16), b.astype(bf16), preferred_element_type=f32)

    # -------- fused node + edge encoders (one block-diagonal MXU push) --------
    xe  = s_ref[XE_OFF:XE_OFF + N_NODES + N_EDGES, :ENC_K]   # [N+E, 32]
    wne = s_ref[WNE_OFF:WNE_OFF + ENC_K, :HID]                # [32, HID]
    enc = mm(xe, wne)                                          # [N+E, HID]
    x0  = enc[:N_NODES] + a_ref[BN_ROW:BN_ROW + 1, :HID]
    ea  = enc[N_NODES:N_NODES + N_EDGES] + a_ref[BE_ROW:BE_ROW + 1, :HID]

    # -------- one-hot graph operators (exact in bf16) --------
    G  = s_ref[G_OFF:G_OFF + N_EDGES, :N_NODES]     # [E, N] gather sources
    St = s_ref[S_OFF:S_OFF + N_NODES, :N_EDGES]     # [N, E] scatter-add targets
    P  = s_ref[P_OFF:P_OFF + N_GRAPHS, :N_NODES]    # [B, N] mean pooling

    feats = [x0]
    xc = x0
    for l in range(L):
        # GINEConv: aggr_i = sum_{j->i} ReLU(x_j + e_{ji})
        #           out = mlp((1+eps)*x_i + aggr_i), mlp = (Linear->BN->ReLU) x2
        msg = jnp.maximum(mm(G, xc) + ea, 0.0)                 # [E, HID]
        agg = mm(St, msg)                                       # [N, HID]
        h = xc * a_ref[EPS_ROW + l:EPS_ROW + l + 1, :HID] + agg
        w1 = s_ref[W1_OFF + l * HID:W1_OFF + (l + 1) * HID, :2 * HID]
        w2 = s_ref[W2_OFF + l * 2 * HID:W2_OFF + (l + 1) * 2 * HID, :HID]
        h = jnp.maximum(mm(h, w1) + a_ref[B1_ROW + l:B1_ROW + l + 1, :2 * HID], 0.0)
        h = jnp.maximum(mm(h, w2) + a_ref[B2_ROW + l:B2_ROW + l + 1, :HID], 0.0)
        xc = h
        feats.append(xc)

    # -------- JK('cat') + global_mean_pool + readout Linear (fused) --------
    jk = jnp.concatenate(feats, axis=-1)                        # [N, JK_DIM]
    pooled = mm(P, jk)                                          # [B, JK_DIM]
    r = jnp.maximum(mm(pooled, s_ref[WR_OFF:WR_OFF + JK_DIM, :FFN])
                    + a_ref[BR_ROW:BR_ROW + 1, :FFN], 0.0)
    # final classifier; columns >= OUT are zero padding (lane-dense store)
    out_ref[...] = mm(r, s_ref[WO_OFF:WO_OFF + FFN, :]) + a_ref[BO_ROW:BO_ROW + 1, :]


@jax.jit
def gnn_forward(s_slab, a_slab):
    out = pl.pallas_call(
        gnn_kernel,
        out_shape=jax.ShapeDtypeStruct((N_GRAPHS, OUT_PAD), jnp.float32),
        in_specs=[pl.BlockSpec(memory_space=pltpu.MemorySpace.VMEM),
                  pl.BlockSpec(memory_space=pltpu.MemorySpace.VMEM)],
        out_specs=pl.BlockSpec(memory_space=pltpu.MemorySpace.VMEM),
    )(s_slab, a_slab)
    return out[:, :OUT]


# ---------------------------- pure-JAX references ----------------------------
def forward_ref(eps, x, e, G, St, P, params, dot_fn):
    (wn, bnb, we, beb, w1, b1, w2, b2, wr, brb, wo, bob) = params
    x0 = dot_fn(x, wn) + bnb
    ea = dot_fn(e, we) + beb
    feats = [x0]
    xc = x0
    for l in range(L):
        msg = jnp.maximum(dot_fn(G, xc) + ea, 0.0)
        agg = dot_fn(St, msg)
        h = (1.0 + eps[l]) * xc + agg
        h = jnp.maximum(dot_fn(h, w1[l]) + b1[l], 0.0)
        h = jnp.maximum(dot_fn(h, w2[l]) + b2[l], 0.0)
        xc = h
        feats.append(xc)
    jk = jnp.concatenate(feats, axis=-1)
    pooled = dot_fn(P, jk)
    r = jnp.maximum(dot_fn(pooled, wr) + brb, 0.0)
    return dot_fn(r, wo) + bob


# ---------------------------- setup & run ----------------------------
if __name__ == "__main__":
    key = jax.random.PRNGKey(0)
    ks = list(jax.random.split(key, 16))

    def lin(k, din, dout, scale=0.1):
        kw, kb = jax.random.split(k)
        return (scale * jax.random.normal(kw, (din, dout), jnp.float32),
                scale * jax.random.normal(kb, (1, dout), jnp.float32))

    def fold_bn(w, b, gamma, beta, mean, var):
        # Linear -> BatchNorm1d (eval): y = (xW + b - mean)/sqrt(var+eps)*gamma + beta
        s = gamma / jnp.sqrt(var + BN_EPS)
        return w * s, b * s + (beta - mean * s)

    ones_r = lambda d: jnp.ones((1, d), jnp.float32)
    zeros_r = lambda d: jnp.zeros((1, d), jnp.float32)

    # ---- graph data (2 molecules batched, PyG-style) ----
    x = jax.random.normal(ks[0], (N_NODES, NODE_DIM), jnp.float32)
    e = jax.random.normal(ks[1], (N_EDGES, EDGE_DIM), jnp.float32)
    half = N_EDGES // 2
    src = jnp.concatenate([jax.random.randint(ks[2], (half,), 0, 8),
                           jax.random.randint(ks[3], (half,), 8, 16)])
    tgt = jnp.concatenate([jax.random.randint(ks[4], (half,), 0, 8),
                           jax.random.randint(ks[5], (half,), 8, 16)])
    batch = jnp.concatenate([jnp.zeros(8, jnp.int32), jnp.ones(8, jnp.int32)])

    G  = jax.nn.one_hot(src, N_NODES, dtype=jnp.float32)        # [E, N] gather
    St = jax.nn.one_hot(tgt, N_NODES, dtype=jnp.float32).T      # [N, E] scatter-add
    Pm = jax.nn.one_hot(batch, N_GRAPHS, dtype=jnp.float32).T   # [B, N]
    Pm = Pm / jnp.sum(Pm, axis=1, keepdims=True)                # mean pooling

    # ---- parameters (BN eval mode, default running stats; BN+bias folded) ----
    eps = 0.05 * jax.random.normal(ks[14], (L,), jnp.float32)   # GINE learnable eps
    wn, bnb = lin(ks[6], NODE_DIM, HID)
    we, beb = lin(ks[7], EDGE_DIM, HID)

    w1, b1, w2, b2 = [], [], [], []
    for l in range(L):
        a, ab = lin(ks[8 + l], HID, 2 * HID)
        a, ab = fold_bn(a, ab, ones_r(2 * HID), zeros_r(2 * HID),
                        zeros_r(2 * HID), ones_r(2 * HID))
        c, cb = lin(ks[10 + l], 2 * HID, HID)
        c, cb = fold_bn(c, cb, ones_r(HID), zeros_r(HID), zeros_r(HID), ones_r(HID))
        w1.append(a); b1.append(ab); w2.append(c); b2.append(cb)

    wr, brb = lin(ks[12], JK_DIM, FFN)
    wr, brb = fold_bn(wr, brb, ones_r(FFN), zeros_r(FFN), zeros_r(FFN), ones_r(FFN))
    wo, bob = lin(ks[13], FFN, OUT)

    params = (wn, bnb, we, beb, w1, b1, w2, b2, wr, brb, wo, bob)

    # ---- pack the 2 slabs (one-time, host side) ----
    def place(buf, arr, r, c=0):
        return buf.at[r:r + arr.shape[0], c:c + arr.shape[1]].set(arr)

    s_slab = jnp.zeros((S_ROWS, SW), jnp.float32)
    # block-diagonal node/edge encoder input: x in cols [0,16), e in cols [16,24)
    s_slab = place(s_slab, x, XE_OFF, 0)
    s_slab = place(s_slab, e, XE_OFF + N_NODES, NODE_DIM)
    s_slab = place(s_slab, G, G_OFF)
    s_slab = place(s_slab, St, S_OFF)
    s_slab = place(s_slab, Pm, P_OFF)
    # stacked encoder weights: wn rows [0,16), we rows [16,24), rest zero
    s_slab = place(s_slab, wn, WNE_OFF)
    s_slab = place(s_slab, we, WNE_OFF + NODE_DIM)
    for l in range(L):
        s_slab = place(s_slab, w1[l], W1_OFF + l * HID)
        s_slab = place(s_slab, w2[l], W2_OFF + l * 2 * HID)
    s_slab = place(s_slab, wr, WR_OFF)
    s_slab = place(s_slab, wo, WO_OFF)
    s_slab = s_slab.astype(jnp.bfloat16)

    a_slab = jnp.zeros((A_ROWS, OUT_PAD), jnp.float32)
    a_slab = place(a_slab, bnb, BN_ROW)
    a_slab = place(a_slab, beb, BE_ROW)
    for l in range(L):
        a_slab = place(a_slab, b1[l], B1_ROW + l)
        a_slab = place(a_slab, b2[l], B2_ROW + l)
    a_slab = place(a_slab, brb, BR_ROW)
    a_slab = place(a_slab, bob, BO_ROW)
    for l in range(L):
        a_slab = a_slab.at[EPS_ROW + l, :].set(1.0 + eps[l])

    # ---- run kernel ----
    out = gnn_forward(s_slab, a_slab)
    out = jax.block_until_ready(out)
    assert out.shape == (N_GRAPHS, OUT)

    # ---- correctness ----
    bf16 = jnp.bfloat16
    dot_bf16 = lambda a, b: jnp.dot(a.astype(bf16), b.astype(bf16),
                                    preferred_element_type=jnp.float32)
    dot_f32 = lambda a, b: jnp.dot(a, b, preferred_element_type=jnp.float32,
                                   precision=jax.lax.Precision.HIGHEST)

    # exact mirror of the kernel's bf16-operand / f32-accumulate math
    ref_bf = forward_ref(eps, x, e, G, St, Pm, params, dot_bf16)
    # full-f32 module-semantics reference; looser tolerance covers bf16 rounding
    ref_f32 = forward_ref(eps, x, e, G, St, Pm, params, dot_f32)

    assert jnp.allclose(out, ref_bf, rtol=1e-3, atol=1e-3), (out, ref_bf)
    assert jnp.allclose(out, ref_f32, rtol=5e-2, atol=5e-2), (out, ref_f32)

    print("KERNEL_OK")
</pallas_src>

<mosaic_0001>
module attributes {stable_mosaic.version = 11 : i64} {
  func.func @gnn_kernel(%arg0: memref<496x128xbf16, #tpu.memory_space<vmem>>, %arg1: memref<16x128xf32, #tpu.memory_space<vmem>>, %arg2: memref<2x128xf32, #tpu.memory_space<vmem>>) attributes {dimension_semantics = [], scalar_prefetch = 0 : i64, scratch_operands = 0 : i64, tpu.core_type = #tpu.core_type<tc>} {
    %c0 = arith.constant 0 : index
    %c0_0 = arith.constant 0 : index
    %0 = vector.load %arg0[%c0, %c0_0] : memref<496x128xbf16, #tpu.memory_space<vmem>>, vector<48x32xbf16>
    %c112 = arith.constant 112 : index
    %c0_1 = arith.constant 0 : index
    %1 = vector.load %arg0[%c112, %c0_1] : memref<496x128xbf16, #tpu.memory_space<vmem>>, vector<32x32xbf16>
    %cst = arith.constant dense<0.000000e+00> : vector<48x32xf32>
    %2 = tpu.matmul %0, %1, %cst {dimension_numbers = #tpu.dot_dimension_numbers<[1], [0], [0], [1], [0, 0, 1, 1], [], []>} : vector<48x32xbf16>, vector<32x32xbf16>, vector<48x32xf32> -> vector<48x32xf32>
    %3 = vector.extract_strided_slice %2 {offsets = [0, 0], sizes = [16, 32], strides = [1, 1]} : vector<48x32xf32> to vector<16x32xf32>
    %c0_2 = arith.constant 0 : index
    %c0_3 = arith.constant 0 : index
    %4 = vector.load %arg1[%c0_2, %c0_3] : memref<16x128xf32, #tpu.memory_space<vmem>>, vector<1x32xf32>
    %5 = vector.broadcast %4 : vector<1x32xf32> to vector<16x32xf32>
    %6 = arith.addf %3, %5 : vector<16x32xf32>
    %7 = vector.extract_strided_slice %2 {offsets = [16, 0], sizes = [32, 32], strides = [1, 1]} : vector<48x32xf32> to vector<32x32xf32>
    %c1 = arith.constant 1 : index
    %c0_4 = arith.constant 0 : index
    %8 = vector.load %arg1[%c1, %c0_4] : memref<16x128xf32, #tpu.memory_space<vmem>>, vector<1x32xf32>
    %9 = vector.broadcast %8 : vector<1x32xf32> to vector<32x32xf32>
    %10 = arith.addf %7, %9 : vector<32x32xf32>
    %c48 = arith.constant 48 : index
    %c0_5 = arith.constant 0 : index
    %11 = vector.load %arg0[%c48, %c0_5] : memref<496x128xbf16, #tpu.memory_space<vmem>>, vector<32x16xbf16>
    %c80 = arith.constant 80 : index
    %c0_6 = arith.constant 0 : index
    %12 = vector.load %arg0[%c80, %c0_6] : memref<496x128xbf16, #tpu.memory_space<vmem>>, vector<16x32xbf16>
    %c96 = arith.constant 96 : index
    %c0_7 = arith.constant 0 : index
    %13 = vector.load %arg0[%c96, %c0_7] : memref<496x128xbf16, #tpu.memory_space<vmem>>, vector<2x16xbf16>
    %14 = arith.truncf %6 : vector<16x32xf32> to vector<16x32xbf16>
    %cst_8 = arith.constant dense<0.000000e+00> : vector<32x32xf32>
    %15 = tpu.matmul %11, %14, %cst_8 {dimension_numbers = #tpu.dot_dimension_numbers<[1], [0], [0], [1], [0, 0, 1, 1], [], []>} : vector<32x16xbf16>, vector<16x32xbf16>, vector<32x32xf32> -> vector<32x32xf32>
    %16 = arith.addf %15, %10 : vector<32x32xf32>
    %cst_9 = arith.constant 0.000000e+00 : f32
    %17 = vector.broadcast %cst_9 : f32 to vector<32x32xf32>
    %18 = arith.maximumf %16, %17 : vector<32x32xf32>
    %19 = arith.truncf %18 : vector<32x32xf32> to vector<32x32xbf16>
    %cst_10 = arith.constant dense<0.000000e+00> : vector<16x32xf32>
    %20 = tpu.matmul %12, %19, %cst_10 {dimension_numbers = #tpu.dot_dimension_numbers<[1], [0], [0], [1], [0, 0, 1, 1], [], []>} : vector<16x32xbf16>, vector<32x32xbf16>, vector<16x32xf32> -> vector<16x32xf32>
    %c8 = arith.constant 8 : index
    %c0_11 = arith.constant 0 : index
    %21 = vector.load %arg1[%c8, %c0_11] : memref<16x128xf32, #tpu.memory_space<vmem>>, vector<1x32xf32>
    %22 = vector.broadcast %21 : vector<1x32xf32> to vector<16x32xf32>
    %23 = arith.mulf %6, %22 : vector<16x32xf32>
    %24 = arith.addf %23, %20 : vector<16x32xf32>
    %c144 = arith.constant 144 : index
    %c0_12 = arith.constant 0 : index
    %25 = vector.load %arg0[%c144, %c0_12] : memref<496x128xbf16, #tpu.memory_space<vmem>>, vector<32x64xbf16>
    %c208 = arith.constant 208 : index
    %c0_13 = arith.constant 0 : index
    %26 = vector.load %arg0[%c208, %c0_13] : memref<496x128xbf16, #tpu.memory_space<vmem>>, vector<64x32xbf16>
    %27 = arith.truncf %24 : vector<16x32xf32> to vector<16x32xbf16>
    %cst_14 = arith.constant dense<0.000000e+00> : vector<16x64xf32>
    %28 = tpu.matmul %27, %25, %cst_14 {dimension_numbers = #tpu.dot_dimension_numbers<[1], [0], [0], [1], [0, 0, 1, 1], [], []>} : vector<16x32xbf16>, vector<32x64xbf16>, vector<16x64xf32> -> vector<16x64xf32>
    %c2 = arith.constant 2 : index
    %c0_15 = arith.constant 0 : index
    %29 = vector.load %arg1[%c2, %c0_15] : memref<16x128xf32, #tpu.memory_space<vmem>>, vector<1x64xf32>
    %30 = vector.broadcast %29 : vector<1x64xf32> to vector<16x64xf32>
    %31 = arith.addf %28, %30 : vector<16x64xf32>
    %cst_16 = arith.constant 0.000000e+00 : f32
    %32 = vector.broadcast %cst_16 : f32 to vector<16x64xf32>
    %33 = arith.maximumf %31, %32 : vector<16x64xf32>
    %34 = arith.truncf %33 : vector<16x64xf32> to vector<16x64xbf16>
    %cst_17 = arith.constant dense<0.000000e+00> : vector<16x32xf32>
    %35 = tpu.matmul %34, %26, %cst_17 {dimension_numbers = #tpu.dot_dimension_numbers<[1], [0], [0], [1], [0, 0, 1, 1], [], []>} : vector<16x64xbf16>, vector<64x32xbf16>, vector<16x32xf32> -> vector<16x32xf32>
    %c4 = arith.constant 4 : index
    %c0_18 = arith.constant 0 : index
    %36 = vector.load %arg1[%c4, %c0_18] : memref<16x128xf32, #tpu.memory_space<vmem>>, vector<1x32xf32>
    %37 = vector.broadcast %36 : vector<1x32xf32> to vector<16x32xf32>
    %38 = arith.addf %35, %37 : vector<16x32xf32>
    %cst_19 = arith.constant 0.000000e+00 : f32
    %39 = vector.broadcast %cst_19 : f32 to vector<16x32xf32>
    %40 = arith.maximumf %38, %39 : vector<16x32xf32>
    %41 = arith.truncf %40 : vector<16x32xf32> to vector<16x32xbf16>
    %cst_20 = arith.constant dense<0.000000e+00> : vector<32x32xf32>
    %42 = tpu.matmul %11, %41, %cst_20 {dimension_numbers = #tpu.dot_dimension_numbers<[1], [0], [0], [1], [0, 0, 1, 1], [], []>} : vector<32x16xbf16>, vector<16x32xbf16>, vector<32x32xf32> -> vector<32x32xf32>
    %43 = arith.addf %42, %10 : vector<32x32xf32>
    %cst_21 = arith.constant 0.000000e+00 : f32
    %44 = vector.broadcast %cst_21 : f32 to vector<32x32xf32>
    %45 = arith.maximumf %43, %44 : vector<32x32xf32>
    %46 = arith.truncf %45 : vector<32x32xf32> to vector<32x32xbf16>
    %cst_22 = arith.constant dense<0.000000e+00> : vector<16x32xf32>
    %47 = tpu.matmul %12, %46, %cst_22 {dimension_numbers = #tpu.dot_dimension_numbers<[1], [0], [0], [1], [0, 0, 1, 1], [], []>} : vector<16x32xbf16>, vector<32x32xbf16>, vector<16x32xf32> -> vector<16x32xf32>
    %c9 = arith.constant 9 : index
    %c0_23 = arith.constant 0 : index
    %48 = vector.load %arg1[%c9, %c0_23] : memref<16x128xf32, #tpu.memory_space<vmem>>, vector<1x32xf32>
    %49 = vector.broadcast %48 : vector<1x32xf32> to vector<16x32xf32>
    %50 = arith.mulf %40, %49 : vector<16x32xf32>
    %51 = arith.addf %50, %47 : vector<16x32xf32>
    %c176 = arith.constant 176 : index
    %c0_24 = arith.constant 0 : index
    %52 = vector.load %arg0[%c176, %c0_24] : memref<496x128xbf16, #tpu.memory_space<vmem>>, vector<32x64xbf16>
    %c272 = arith.constant 272 : index
    %c0_25 = arith.constant 0 : index
    %53 = vector.load %arg0[%c272, %c0_25] : memref<496x128xbf16, #tpu.memory_space<vmem>>, vector<64x32xbf16>
    %54 = arith.truncf %51 : vector<16x32xf32> to vector<16x32xbf16>
    %cst_26 = arith.constant dense<0.000000e+00> : vector<16x64xf32>
    %55 = tpu.matmul %54, %52, %cst_26 {dimension_numbers = #tpu.dot_dimension_numbers<[1], [0], [0], [1], [0, 0, 1, 1], [], []>} : vector<16x32xbf16>, vector<32x64xbf16>, vector<16x64xf32> -> vector<16x64xf32>
    %c3 = arith.constant 3 : index
    %c0_27 = arith.constant 0 : index
    %56 = vector.load %arg1[%c3, %c0_27] : memref<16x128xf32, #tpu.memory_space<vmem>>, vector<1x64xf32>
    %57 = vector.broadcast %56 : vector<1x64xf32> to vector<16x64xf32>
    %58 = arith.addf %55, %57 : vector<16x64xf32>
    %cst_28 = arith.constant 0.000000e+00 : f32
    %59 = vector.broadcast %cst_28 : f32 to vector<16x64xf32>
    %60 = arith.maximumf %58, %59 : vector<16x64xf32>
    %61 = arith.truncf %60 : vector<16x64xf32> to vector<16x64xbf16>
    %cst_29 = arith.constant dense<0.000000e+00> : vector<16x32xf32>
    %62 = tpu.matmul %61, %53, %cst_29 {dimension_numbers = #tpu.dot_dimension_numbers<[1], [0], [0], [1], [0, 0, 1, 1], [], []>} : vector<16x64xbf16>, vector<64x32xbf16>, vector<16x32xf32> -> vector<16x32xf32>
    %c5 = arith.constant 5 : index
    %c0_30 = arith.constant 0 : index
    %63 = vector.load %arg1[%c5, %c0_30] : memref<16x128xf32, #tpu.memory_space<vmem>>, vector<1x32xf32>
    %64 = vector.broadcast %63 : vector<1x32xf32> to vector<16x32xf32>
    %65 = arith.addf %62, %64 : vector<16x32xf32>
    %cst_31 = arith.constant 0.000000e+00 : f32
    %66 = vector.broadcast %cst_31 : f32 to vector<16x32xf32>
    %67 = arith.maximumf %65, %66 : vector<16x32xf32>
    %68 = tpu.concatenate %6, %40, %67 in 1 : vector<16x32xf32>, vector<16x32xf32>, vector<16x32xf32> -> vector<16x96xf32>
    %69 = arith.truncf %68 : vector<16x96xf32> to vector<16x96xbf16>
    %cst_32 = arith.constant dense<0.000000e+00> : vector<2x96xf32>
    %70 = tpu.matmul %13, %69, %cst_32 {dimension_numbers = #tpu.dot_dimension_numbers<[1], [0], [0], [1], [0, 0, 1, 1], [], []>} : vector<2x16xbf16>, vector<16x96xbf16>, vector<2x96xf32> -> vector<2x96xf32>
    %c336 = arith.constant 336 : index
    %c0_33 = arith.constant 0 : index
    %71 = vector.load %arg0[%c336, %c0_33] : memref<496x128xbf16, #tpu.memory_space<vmem>>, vector<96x64xbf16>
    %72 = arith.truncf %70 : vector<2x96xf32> to vector<2x96xbf16>
    %cst_34 = arith.constant dense<0.000000e+00> : vector<2x64xf32>
    %73 = tpu.matmul %72, %71, %cst_34 {dimension_numbers = #tpu.dot_dimension_numbers<[1], [0], [0], [1], [0, 0, 1, 1], [], []>} : vector<2x96xbf16>, vector<96x64xbf16>, vector<2x64xf32> -> vector<2x64xf32>
    %c6 = arith.constant 6 : index
    %c0_35 = arith.constant 0 : index
    %74 = vector.load %arg1[%c6, %c0_35] : memref<16x128xf32, #tpu.memory_space<vmem>>, vector<1x64xf32>
    %75 = vector.broadcast %74 : vector<1x64xf32> to vector<2x64xf32>
    %76 = arith.addf %73, %75 : vector<2x64xf32>
    %cst_36 = arith.constant 0.000000e+00 : f32
    %77 = vector.broadcast %cst_36 : f32 to vector<2x64xf32>
    %78 = arith.maximumf %76, %77 : vector<2x64xf32>
    %c432 = arith.constant 432 : index
    %c0_37 = arith.constant 0 : index
    %79 = vector.load %arg0[%c432, %c0_37] : memref<496x128xbf16, #tpu.memory_space<vmem>>, vector<64x128xbf16>
    %80 = arith.truncf %78 : vector<2x64xf32> to vector<2x64xbf16>
    %cst_38 = arith.constant dense<0.000000e+00> : vector<2x128xf32>
    %81 = tpu.matmul %80, %79, %cst_38 {dimension_numbers = #tpu.dot_dimension_numbers<[1], [0], [0], [1], [0, 0, 1, 1], [], []>} : vector<2x64xbf16>, vector<64x128xbf16>, vector<2x128xf32> -> vector<2x128xf32>
    %c7 = arith.constant 7 : index
    %c0_39 = arith.constant 0 : index
    %82 = vector.load %arg1[%c7, %c0_39] : memref<16x128xf32, #tpu.memory_space<vmem>>, vector<1x128xf32>
    %83 = vector.broadcast %82 : vector<1x128xf32> to vector<2x128xf32>
    %84 = arith.addf %81, %83 : vector<2x128xf32>
    %c0_40 = arith.constant 0 : index
    %c0_41 = arith.constant 0 : index
    %85 = vector.load %arg2[%c0_40, %c0_41] : memref<2x128xf32, #tpu.memory_space<vmem>>, vector<2x128xf32>
    tpu.vector_store %arg2[%c0_40, %c0_41], %84 {strides = array<i32>} : memref<2x128xf32, #tpu.memory_space<vmem>>, vector<2x128xf32>,
    return
  }
}

</mosaic_0001>

<bundles_post_ra>
// kernel: gnn_forward.1
= control target key start
LH: loop header
LB: loop body
LE: loop exit
PB: predicated region body
PF: predicated region fallthrough
CT: control target
= control target key end

     0   :  { %7 = vsyncpa [#allocation3], 0  ;;  %s1488_s0 = inlined_call_operand.hbm [shape: bf16[496,128], index: 0, kind: input, shape index: {}]   ;;  %s1489_s1 = inlined_call_operand.hbm [shape: f32[16,128], index: 1, kind: input, shape index: {}]   ;;  %s1490_s2 = inlined_call_operand.hbm [shape: f32[2,128], index: 2, kind: output, shape index: {}]  }
   0x1   :  { %8 = vsyncpa [#allocation6], 0 }
   0x2   :  { %9 = vsyncpa [#allocation4], 0  ;;  %s1314_s9 = smov [#allocation2]   ;;  %s1242_s13 = scalar_lea.hbm %s1488_s0, 3968 }
   0x3   :  { %s15_s10 = sshll.u32 %s1314_s9, 4  ;;  %p1243_p0 = scmp.ne.s32.totalorder %s1488_s0, %s1242_s13  ;;  %s16_s10 = int_to_ptr.vmem [resolvable:$true] %s15_s10 }
   0x4   :  { %p1246_p1 = scmp.lt.u32.totalorder %s1242_s13, %s1488_s0 }
   0x6   :  { %p1248_p2 = pnand %p1246_p1, %p1243_p0 }
   0x8   :  { %1251 = shalt.err (!%p1248_p2)
}
   0x9   :  { %s1252_s18 = scalar_lea.vmem %s16_s10, 3968  ;;  %p1257_p4 = scmp.lt.s32.totalorder %s16_s10, %s16_s10 }
   0xa   :  { %p1253_p3 = scmp.ne.s32.totalorder %s16_s10, %s1252_s18  ;;  %p1258_p5 = scmp.lt.s32.totalorder %s1252_s18, %s1252_s18 }
   0xc   :  { %p1259_p6 = por %p1258_p5, %p1257_p4 }
   0xe   :  { %p1260_p7 = pnand %p1259_p6, %p1253_p3 }
  0x10   :  { %1263 = shalt.err (!%p1260_p7)
}
  0x11   :  { %s1315_s19 = smov 64   ;;  %s1316_s20 = smov 4  }
  0x12   :  { %21 = dma.hbm_to_vmem [thread:$0]  %s1488_s0, 3968, %s16_s10, [#allocation3], %s1315_s19, %s1315_s19, %s1316_s20  }
  0x13   :  { %s1317_s23 = smov [#allocation5]   ;;  %s1264_s27 = scalar_lea.hbm %s1489_s1, 256 }
  0x14   :  { %s27_s24 = sshll.u32 %s1317_s23, 4  ;;  %p1265_p8 = scmp.ne.s32.totalorder %s1489_s1, %s1264_s27  ;;  %s28_s24 = int_to_ptr.vmem [resolvable:$true] %s27_s24 }
  0x15   :  { %p1268_p9 = scmp.lt.u32.totalorder %s1264_s27, %s1489_s1 }
  0x17   :  { %p1270_p10 = pnand %p1268_p9, %p1265_p8 }
  0x19   :  { %1273 = shalt.err (!%p1270_p10)
}
  0x1a   :  { %s1274_s4 = scalar_lea.vmem %s28_s24, 256  ;;  %p1279_p12 = scmp.lt.s32.totalorder %s28_s24, %s28_s24 }
  0x1b   :  { %p1275_p11 = scmp.ne.s32.totalorder %s28_s24, %s1274_s4  ;;  %p1280_p13 = scmp.lt.s32.totalorder %s1274_s4, %s1274_s4 }
  0x1d   :  { %p1281_p0 = por %p1280_p13, %p1279_p12 }
  0x1f   :  { %p1282_p1 = pnand %p1281_p0, %p1275_p11 }
  0x21   :  { %1285 = shalt.err (!%p1282_p1)
}
  0x22   :  { %s1318_s0 = smov 128   ;;  %s1319_s5 = smov 8  }
  0x23   :  { %33 = dma.hbm_to_vmem [thread:$0]  %s1489_s1, 256, %s28_s24, [#allocation6], %s1318_s0, %s1318_s0, %s1319_s5  }
  0x24   :  { %1308 = dma.done.wait [#allocation3], 3968  }
  0x25   :  { %1309 = vsyncadd [#allocation3], 4294963328 }
  0x26   :  { %1310 = dma.done.wait [#allocation6], 256  }
  0x27   :  { %1311 = vsyncadd [#allocation6], 4294967040  ;;  %v1320_v0 = vmov 0.0   ;;  %vm1321_vm0 = vmmov 0   ;;  %v1212_v1 = vld [vmem:[#allocation2 + $0x38] sm:$0xff]   ;;  %v1213_v2 = vld [vmem:[#allocation2 + $0x40] sm:$0xff]  }
  0x28   :  { %1074 = vmatprep.subr.bf16.mxu0 %v1320_v0  ;;  %1078 = vmatprep.mubr.msk.bf16.mxu0 %vm1321_vm0, %v1320_v0  ;;  %vm78_vm1 = vcmask 261120   ;;  %v1214_v3 = vld [vmem:[#allocation2] sm:$0xff]   ;;  %v1215_v4 = vld [vmem:[#allocation2 + $0x8] sm:$0xff]   ;;  %v1216_v5 = vld [vmem:[#allocation2 + $0x10] sm:$0xff]   ;;  %vm179_vm2 = vcmask 130048   ;;  %vm405_vm3 = vcmask 523264  }
  0x29   :  { %1075 = vmatpush3.bf16.msra.mxu0 %v1212_v1  ;;  %v1376_v6 = vld [vmem:[#allocation2 + $0x18] sm:$0xff]   ;;  %v1389_v15 = vld [vmem:[#allocation2 + $0x20] sm:$0xff]   ;;  %v1409_v43 = vld [vmem:[#allocation2 + $0x28] sm:$0xff]   ;;  %s1322_s1 = smov 32   ;;  %vm828_vm4 = vcmask 785408   ;;  %s1323_s8 = smov [#allocation7]  }
  0x2a   :  { %1076 = vmatprep.subr.bf16.mxu0 %v1320_v0  ;;  %1092 = vmatprep.mubr.msk.bf16.mxu1 %vm179_vm2, %v1376_v6  ;;  %v979_v8 = vld [vmem:[#allocation5] ss:$0 sm:$0xff]  ;;  %v980_v24 = vld [vmem:[#allocation5 + $0x1] ss:$0 sm:$0xff]  ;;  %v1220_v44 = vld [vmem:[#allocation2 + $0x48] sm:$0xff]   ;;  %s961_s9 = sshll.u32 %s1323_s8, 4  ;;  %s962_s9 = int_to_ptr.vmem [resolvable:$true] %s961_s9 }
  0x2b   :  { %v1221_v45 = vld [vmem:[#allocation2 + $0x50] sm:$0xff]   ;;  %v1222_v46 = vld [vmem:[#allocation2 + $0x68] sm:$0xff]   ;;  %v987_v48 = vld [vmem:[#allocation5 + $0x8] ss:$0 sm:$0xff]  ;;  %s1286_s10 = scalar_lea.vmem %s962_s9, 32  ;;  %p1291_p3 = scmp.lt.s32.totalorder %s962_s9, %s962_s9 }
  0x2c   :  { %v1223_v47 = vld [vmem:[#allocation2 + $0x70] sm:$0xff]   ;;  %v1224_v58 = vld [vmem:[#allocation2 + $0x78] sm:$0xff]   ;;  %v1225_v59 = vld [vmem:[#allocation2 + $0x80] sm:$0xff]   ;;  %p1287_p2 = scmp.ne.s32.totalorder %s962_s9, %s1286_s10  ;;  %p1292_p4 = scmp.lt.s32.totalorder %s1286_s10, %s1286_s10 }
  0x2d   :  { %1077 = vmatpush3.bf16.msra.mxu0 %v1213_v2  ;;  %v988_v60 = vld [vmem:[#allocation5 + $0x2] ss:$0 sm:$0xff] }
  0x2e   :  { %1112 = vmatprep.subr.bf16.mxu0 %v1320_v0  ;;  %p1293_p5 = por %p1292_p4, %p1291_p3 }
  0x30   :  { %1079 = vmatmul.mubr.msk.bf16.vlgmr.msra.gmra.mrb[0].mxu0 %vm78_vm1, %v1214_v3  ;;  %p1294_p6 = pnand %p1293_p5, %p1287_p2 }
  0x31   :  { %1082 = vmatprep.mubr.msk.bf16.mxu0 %vm1321_vm0, %v1320_v0  ;;  %1113 = vmatpush3.bf16.msra.mxu0 %v1222_v46 }
  0x32   :  { %1114 = vmatprep.subr.bf16.mxu0 %v1320_v0 }
  0x35   :  { %1115 = vmatpush3.bf16.msra.mxu0 %v1223_v47 }
  0x36   :  { %1116 = vmatprep.subr.bf16.mxu0 %v1320_v0 }
  0x38   :  { %1083 = vmatmul.mubr.msk.bf16.gmra.mrb[4].mxu0 %vm78_vm1, %v1215_v4 }
  0x39   :  { %1086 = vmatprep.mubr.msk.bf16.mxu0 %vm1321_vm0, %v1320_v0  ;;  %1117 = vmatpush3.bf16.msra.mxu0 %v1224_v58 }
  0x3a   :  { %1118 = vmatprep.subr.bf16.mxu0 %v1320_v0 }
  0x3d   :  { %1119 = vmatpush3.bf16.msra.mxu0 %v1225_v59 }
  0x3e   :  { %1138 = vmatprep.subr.bf16.mxu0 %v1320_v0 }
  0x40   :  { %1087 = vmatmul.mubr.msk.bf16.gmra.mrb[8].mxu0 %vm78_vm1, %v1216_v5 }
  0x41   :  { %1120 = vmatprep.mubr.msk.bf16.mxu0 %vm1321_vm0, %v1320_v0 }
 0x103   :  { %v122_v7 = vpop.f32.mrb[0].mxu0 }
 0x104   :  { %v1080_v9 = vpop.f32.mrb[1].mxu0  ;;  %v1383_v11 = vadd.f32 %v979_v8, %v122_v7 }
 0x105   :  { %v125_v10 = vpop.f32.mrb[2].mxu0 }
 0x106   :  { %v1385_v12 = vadd.f32 %v979_v8, %v125_v10  ;;  %v1081_v13 = vpop.f32.mrb[3].mxu0  ;;  %v295_v50 = vmul.f32 %v987_v48, %v1383_v11 }
 0x108   :  { %v168_v14 = vpack.c.bf16 %v1385_v12, %v1383_v11  ;;  %v296_v52 = vmul.f32 %v987_v48, %v1385_v12  ;;  %v1230_v48 = vld [vmem:[#allocation2 + $0x98] sm:$0xff]  }
 0x10a   :  { %1090 = vmatprep.subr.bf16.mxu1 %v168_v14 }
 0x10b   :  { %1091 = vmatpush3.bf16.msra.mxu1 %v168_v14  ;;  %v130_v16 = vpop.f32.mrb[4].mxu0 }
 0x10c   :  { %1096 = vmatprep.subr.bf16.mxu1 %v1320_v0  ;;  %v1084_v17 = vpop.f32.mrb[5].mxu0  ;;  %v1400_v27 = vadd.f32 %v980_v24, %v130_v16 }
 0x10d   :  { %v133_v18 = vpop.f32.mrb[6].mxu0 }
 0x10e   :  { %1093 = vmatmul.mubr.msk.bf16.vlgmr.msra.gmra.mrb[0].mxu1 %vm179_vm2, %v1389_v15  ;;  %v1085_v19 = vpop.f32.mrb[7].mxu0  ;;  %v1403_v31 = vadd.f32 %v980_v24, %v133_v18 }
 0x10f   :  { %1100 = vmatprep.mubr.msk.bf16.mxu1 %vm1321_vm0, %v1320_v0 }
 0x113   :  { %v138_v20 = vpop.f32.mrb[8].mxu0 }
 0x114   :  { %v1088_v21 = vpop.f32.mrb[9].mxu0  ;;  %v1396_v25 = vadd.f32 %v980_v24, %v138_v20 }
 0x115   :  { %v141_v22 = vpop.f32.mrb[10].mxu0 }
 0x116   :  { %v1089_v23 = vpop.f32.mrb[11].mxu0  ;;  %v1398_v26 = vadd.f32 %v980_v24, %v141_v22 }
 0x1e1   :  { %v1094_v28 = vpop.f32.mrb[0].mxu1 }
 0x1e2   :  { %v229_v29 = vadd.f32 %v1094_v28, %v1396_v25  ;;  %v220_v30 = vpop.f32.mrb[1].mxu1 }
 0x1e3   :  { %v221_v32 = vadd.f32 %v220_v30, %v1400_v27  ;;  %v1095_v33 = vpop.f32.mrb[2].mxu1 }
 0x1e4   :  { %v232_v34 = vadd.f32 %v1095_v33, %v1398_v26  ;;  %v223_v35 = vpop.f32.mrb[3].mxu1  ;;  %v237_v37 = vmax.f32 %v229_v29, 0.0 }
 0x1e5   :  { %v224_v36 = vadd.f32 %v223_v35, %v1403_v31  ;;  %v235_v39 = vmax.f32 %v221_v32, 0.0 }
 0x1e6   :  { %v238_v38 = vmax.f32 %v232_v34, 0.0 }
 0x1e7   :  { %v236_v40 = vmax.f32 %v224_v36, 0.0 }
 0x1e8   :  { %v240_v41 = vpack.c.bf16 %v238_v38, %v237_v37  ;;  %v1001_v38 = vld [vmem:[#allocation5 + $0x9] ss:$0 sm:$0xff] }
 0x1e9   :  { %v239_v42 = vpack.c.bf16 %v236_v40, %v235_v39 }
 0x1eb   :  { %1097 = vmatpush3.bf16.msra.mxu1 %v239_v42 }
 0x1ec   :  { %1098 = vmatprep.subr.bf16.mxu1 %v1320_v0 }
 0x1ef   :  { %1099 = vmatpush3.bf16.msra.mxu1 %v240_v41 }
 0x1f0   :  { %1104 = vmatprep.subr.bf16.mxu1 %v1320_v0 }
 0x1f2   :  { %1101 = vmatmul.mubr.msk.bf16.vlgmr.msra.gmra.mrb[4].mxu1 %vm78_vm1, %v1409_v43 }
 0x1f3   :  { %1108 = vmatprep.mubr.msk.bf16.mxu1 %vm1321_vm0, %v1320_v0  ;;  %1105 = vmatpush3.bf16.msra.mxu1 %v1220_v44 }
 0x1f4   :  { %1106 = vmatprep.subr.bf16.mxu1 %v1320_v0 }
 0x1f7   :  { %1107 = vmatpush3.bf16.msra.mxu1 %v1221_v45 }
 0x2c5   :  { %v283_v49 = vpop.f32.mrb[4].mxu1 }
 0x2c6   :  { %v1102_v51 = vpop.f32.mrb[5].mxu1  ;;  %v297_v54 = vadd.f32 %v295_v50, %v283_v49  ;;  %v1231_v49 = vld [vmem:[#allocation2 + $0xa0] sm:$0xff]   ;;  %v1002_v50 = vld [vmem:[#allocation5 + $0x3] ss:$0 sm:$0xff] }
 0x2c7   :  { %v286_v53 = vpop.f32.mrb[6].mxu1 }
 0x2c8   :  { %v298_v55 = vadd.f32 %v296_v52, %v286_v53  ;;  %v1103_v56 = vpop.f32.mrb[7].mxu1 }
 0x2ca   :  { %v311_v57 = vpack.c.bf16 %v298_v55, %v297_v54 }
 0x2cc   :  { %1109 = vmatmul.mubr.msk.bf16.vlgmr.msra.gmra.mrb[8].mxu1 %vm78_vm1, %v311_v57 }
 0x2cd   :  { %1126 = vmatprep.mubr.msk.bf16.mxu1 %vm179_vm2, %v1376_v6  ;;  %v992_v6 = vld [vmem:[#allocation5 + $0x4] ss:$0 sm:$0xff] }
 0x39f   :  { %v366_v61 = vpop.f32.mrb[8].mxu1 }
 0x3a0   :  { %v367_v62 = vadd.f32 %v988_v60, %v366_v61  ;;  %v1110_v63 = vpop.f32.mrb[9].mxu1 }
 0x3a1   :  { %v369_v1 = vpop.f32.mrb[10].mxu1 }
 0x3a2   :  { %v370_v2 = vadd.f32 %v988_v60, %v369_v1  ;;  %v1111_v3 = vpop.f32.mrb[11].mxu1  ;;  %v373_v4 = vmax.f32 %v367_v62, 0.0  ;;  %v1006_v60 = vld [vmem:[#allocation5 + $0x5] ss:$0 sm:$0xff] }
 0x3a4   :  { %v374_v5 = vmax.f32 %v370_v2, 0.0 }
 0x3a6   :  { %v375_v7 = vpack.c.bf16 %v374_v5, %v373_v4 }
 0x3a8   :  { %1121 = vmatmul.mubr.msk.bf16.vlgmr.msra.gmra.mrb[12].mxu0 %vm405_vm3, %v375_v7 }
 0x3a9   :  { %1142 = vmatprep.mubr.msk.bf16.mxu0 %vm1321_vm0, %v1320_v0 }
 0x47b   :  { %v443_v8 = vpop.f32.mrb[12].mxu0 }
 0x47c   :  { %v444_v9 = vadd.f32 %v992_v6, %v443_v8  ;;  %v1122_v10 = vpop.f32.mrb[13].mxu0 }
 0x47d   :  { %v446_v13 = vpop.f32.mrb[14].mxu0 }
 0x47e   :  { %v447_v14 = vadd.f32 %v992_v6, %v446_v13  ;;  %v1123_v16 = vpop.f32.mrb[15].mxu0  ;;  %v450_v17 = vmax.f32 %v444_v9, 0.0 }
 0x480   :  { %v451_v18 = vmax.f32 %v447_v14, 0.0  ;;  %v554_v39 = vmul.f32 %v1001_v38, %v450_v17 }
 0x482   :  { %v1202_v19 = vpack.i.bf16 %v451_v18, %v450_v17  ;;  %v452_v20 = vpack.c.bf16 %v451_v18, %v450_v17 }
 0x484   :  { %1203 = vrot.lane.b32.xlu0 %v1202_v19, %s1322_s1  ;;  %1124 = vmatprep.subr.bf16.mxu1 %v452_v20 }
 0x485   :  { %1125 = vmatpush3.bf16.msra.mxu1 %v452_v20 }
 0x486   :  { %1130 = vmatprep.subr.bf16.mxu1 %v1320_v0 }
 0x488   :  { %1127 = vmatmul.mubr.msk.bf16.vlgmr.msra.gmra.mrb[12].mxu1 %vm179_vm2, %v1389_v15 }
 0x489   :  { %1134 = vmatprep.mubr.msk.bf16.mxu1 %vm1321_vm0, %v1320_v0 }
 0x4f6   :  { %v1204_v6 = vpop.permute.xlu0 %1203 }
 0x4f7   :  { %v1206_v8 = vunpack.i.h.bf16 %v1204_v6  ;;  %v1205_v9 = vunpack.i.l.bf16 %v1204_v6 }
 0x4f9   :  { %v727_v16 = vsel %vm78_vm1, %v1385_v12, %v1206_v8  ;;  %v726_v17 = vsel %vm78_vm1, %v1383_v11, %v1205_v9  ;;  %v1234_v11 = vld [vmem:[#allocation2 + $0xb8] sm:$0xff]   ;;  %v1235_v12 = vld [vmem:[#allocation2 + $0xc0] sm:$0xff]  }
 0x55b   :  { %v1128_v21 = vpop.f32.mrb[12].mxu1 }
 0x55c   :  { %v496_v22 = vadd.f32 %v1128_v21, %v1396_v25  ;;  %v487_v23 = vpop.f32.mrb[13].mxu1  ;;  %v1226_v25 = vld [vmem:[#allocation2 + $0x58] sm:$0xff]   ;;  %v167_v21 = vld [vmem:[#allocation2 + $0x30] sm:$0x1] }
 0x55d   :  { %v488_v24 = vadd.f32 %v487_v23, %v1400_v27  ;;  %v1129_v28 = vpop.f32.mrb[14].mxu1  ;;  %1139 = vmatpush3.bf16.msra.mxu0 %v1226_v25  ;;  %v1228_v27 = vld [vmem:[#allocation2 + $0x88] sm:$0xff]   ;;  %v1233_v23 = vld [vmem:[#allocation2 + $0xb0] sm:$0xff]   ;;  %v1013_v25 = vld [vmem:[#allocation5 + $0x6] ss:$0 sm:$0xff] }
 0x55e   :  { %v499_v29 = vadd.f32 %v1129_v28, %v1398_v26  ;;  %v490_v30 = vpop.f32.mrb[15].mxu1  ;;  %v504_v33 = vmax.f32 %v496_v22, 0.0  ;;  %1140 = vmatprep.subr.bf16.mxu0 %v1320_v0  ;;  %v1227_v26 = vld [vmem:[#allocation2 + $0x60] sm:$0xff]   ;;  %v1232_v22 = vld [vmem:[#allocation2 + $0xa8] sm:$0xff]   ;;  %v1237_v28 = vld [vmem:[#allocation2 + $0xd0] sm:$0xff]  }
 0x55f   :  { %v491_v32 = vadd.f32 %v490_v30, %v1403_v31  ;;  %v502_v35 = vmax.f32 %v488_v24, 0.0  ;;  %v1229_v31 = vld [vmem:[#allocation2 + $0x90] sm:$0xff]   ;;  %v1236_v24 = vld [vmem:[#allocation2 + $0xc8] sm:$0xff]   ;;  %v1239_v30 = vld [vmem:[#allocation2 + $0xe0] sm:$0xff]  }
 0x560   :  { %v505_v34 = vmax.f32 %v499_v29, 0.0  ;;  %v1238_v29 = vld [vmem:[#allocation2 + $0xd8] sm:$0xff]  }
 0x561   :  { %v503_v36 = vmax.f32 %v491_v32, 0.0  ;;  %1141 = vmatpush3.bf16.msra.mxu0 %v1227_v26 }
 0x562   :  { %v507_v15 = vpack.c.bf16 %v505_v34, %v504_v33  ;;  %1158 = vmatprep.subr.bf16.mxu0 %v1320_v0 }
 0x563   :  { %v506_v37 = vpack.c.bf16 %v503_v36, %v502_v35 }
 0x565   :  { %1131 = vmatpush3.bf16.msra.mxu1 %v506_v37  ;;  %v1241_v37 = vld [vmem:[#allocation2 + $0xf0] sm:$0xff]  }
 0x566   :  { %1132 = vmatprep.subr.bf16.mxu1 %v1320_v0 }
 0x569   :  { %1133 = vmatpush3.bf16.msra.mxu1 %v507_v15  ;;  %v1240_v15 = vld [vmem:[#allocation2 + $0xe8] sm:$0xff]  }
 0x56a   :  { %1146 = vmatprep.subr.bf16.mxu1 %v1320_v0 }
 0x56c   :  { %1135 = vmatmul.mubr.msk.bf16.vlgmr.msra.gmra.mrb[16].mxu1 %vm78_vm1, %v1409_v43  ;;  %v555_v43 = vmul.f32 %v1001_v38, %v451_v18 }
 0x56d   :  { %1154 = vmatprep.mubr.msk.bf16.mxu1 %vm1321_vm0, %v1320_v0  ;;  %1147 = vmatpush3.bf16.msra.mxu1 %v1228_v27 }
 0x56e   :  { %1148 = vmatprep.subr.bf16.mxu1 %v1320_v0 }
 0x571   :  { %1149 = vmatpush3.bf16.msra.mxu1 %v1229_v31 }
 0x572   :  { %1150 = vmatprep.subr.bf16.mxu1 %v1320_v0 }
 0x575   :  { %1151 = vmatpush3.bf16.msra.mxu1 %v1230_v48 }
 0x576   :  { %1152 = vmatprep.subr.bf16.mxu1 %v1320_v0 }
 0x579   :  { %1153 = vmatpush3.bf16.msra.mxu1 %v1231_v49 }
 0x57a   :  { %1180 = vmatprep.subr.bf16.mxu1 %v1320_v0 }
 0x63f   :  { %v542_v40 = vpop.f32.mrb[16].mxu1 }
 0x640   :  { %v556_v41 = vadd.f32 %v554_v39, %v542_v40  ;;  %v1136_v42 = vpop.f32.mrb[17].mxu1 }
 0x641   :  { %v545_v44 = vpop.f32.mrb[18].mxu1  ;;  %v1021_v42 = vld [vmem:[#allocation5 + $0x7] ss:$0 sm:$0xff] }
 0x642   :  { %v557_v45 = vadd.f32 %v555_v43, %v545_v44  ;;  %v1137_v46 = vpop.f32.mrb[19].mxu1 }
 0x644   :  { %v570_v47 = vpack.c.bf16 %v557_v45, %v556_v41 }
 0x646   :  { %1143 = vmatmul.mubr.msk.bf16.vlgmr.msra.gmra.mrb[16].mxu0 %vm78_vm1, %v570_v47 }
 0x647   :  { %1160 = vmatprep.mubr.msk.bf16.mxu0 %vm1321_vm0, %v1320_v0 }
 0x719   :  { %v625_v51 = vpop.f32.mrb[16].mxu0 }
 0x71a   :  { %v626_v52 = vadd.f32 %v1002_v50, %v625_v51  ;;  %v1144_v53 = vpop.f32.mrb[17].mxu0 }
 0x71b   :  { %v628_v54 = vpop.f32.mrb[18].mxu0 }
 0x71c   :  { %v629_v55 = vadd.f32 %v1002_v50, %v628_v54  ;;  %v1145_v56 = vpop.f32.mrb[19].mxu0  ;;  %v632_v57 = vmax.f32 %v626_v52, 0.0 }
 0x71e   :  { %v633_v58 = vmax.f32 %v629_v55, 0.0 }
 0x720   :  { %v634_v59 = vpack.c.bf16 %v633_v58, %v632_v57 }
 0x722   :  { %1155 = vmatmul.mubr.msk.bf16.vlgmr.msra.gmra.mrb[20].mxu1 %vm405_vm3, %v634_v59 }
 0x723   :  { %1188 = vmatprep.mubr.msk.bf16.mxu1 %vm1321_vm0, %v1320_v0  ;;  %1181 = vmatpush3.bf16.msra.mxu1 %v1238_v29 }
 0x724   :  { %1182 = vmatprep.subr.bf16.mxu1 %v1320_v0 }
 0x727   :  { %1183 = vmatpush3.bf16.msra.mxu1 %v1239_v30 }
 0x728   :  { %1184 = vmatprep.subr.bf16.mxu1 %v1320_v0 }
 0x72b   :  { %1185 = vmatpush3.bf16.msra.mxu1 %v1240_v15 }
 0x72c   :  { %1186 = vmatprep.subr.bf16.mxu1 %v1320_v0 }
 0x72f   :  { %1187 = vmatpush3.bf16.msra.mxu1 %v1241_v37 }
 0x7f5   :  { %v701_v61 = vpop.f32.mrb[20].mxu1 }
 0x7f6   :  { %v702_v62 = vadd.f32 %v1006_v60, %v701_v61  ;;  %v1156_v63 = vpop.f32.mrb[21].mxu1 }
 0x7f7   :  { %v704_v1 = vpop.f32.mrb[22].mxu1 }
 0x7f8   :  { %v705_v2 = vadd.f32 %v1006_v60, %v704_v1  ;;  %v1157_v3 = vpop.f32.mrb[23].mxu1  ;;  %v708_v4 = vmax.f32 %v702_v62, 0.0 }
 0x7fa   :  { %v709_v5 = vmax.f32 %v705_v2, 0.0 }
 0x7fc   :  { %v1207_v7 = vpack.i.bf16 %v709_v5, %v708_v4 }
 0x7fe   :  { %1208 = vrot.lane.b32.xlu0 %v1207_v7, %s1315_s19 }
 0x870   :  { %v1209_v10 = vpop.permute.xlu0 %1208 }
 0x871   :  { %v1211_v13 = vunpack.i.h.bf16 %v1209_v10  ;;  %v1210_v14 = vunpack.i.l.bf16 %v1209_v10 }
 0x873   :  { %v729_v18 = vsel %vm405_vm3, %v727_v16, %v1211_v13  ;;  %v728_v19 = vsel %vm405_vm3, %v726_v17, %v1210_v14 }
 0x874   :  { %v730_v20 = vpack.c.bf16 %v729_v18, %v728_v19 }
 0x876   :  { %1159 = vmatpush3.bf16.msra.mxu0 %v730_v20 }
 0x877   :  { %1164 = vmatprep.subr.bf16.mxu0 %v1320_v0 }
 0x879   :  { %1161 = vmatmul.mubr.msk.bf16.vlgmr.msra.gmra.mrb[20].mxu0 %vm179_vm2, %v167_v21 }
 0x87a   :  { %1165 = vmatpush3.bf16.msra.mxu0 %v1232_v22  ;;  %1176 = vmatprep.mubr.msk.bf16.mxu0 %vm1321_vm0, %v1320_v0 }
 0x87b   :  { %1166 = vmatprep.subr.bf16.mxu0 %v1320_v0 }
 0x87e   :  { %1167 = vmatpush3.bf16.msra.mxu0 %v1233_v23 }
 0x87f   :  { %1168 = vmatprep.subr.bf16.mxu0 %v1320_v0 }
 0x882   :  { %1169 = vmatpush3.bf16.msra.mxu0 %v1234_v11 }
 0x883   :  { %1170 = vmatprep.subr.bf16.mxu0 %v1320_v0 }
 0x886   :  { %1171 = vmatpush3.bf16.msra.mxu0 %v1235_v12 }
 0x887   :  { %1172 = vmatprep.subr.bf16.mxu0 %v1320_v0 }
 0x88a   :  { %1173 = vmatpush3.bf16.msra.mxu0 %v1236_v24 }
 0x88b   :  { %1174 = vmatprep.subr.bf16.mxu0 %v1320_v0 }
 0x88e   :  { %1175 = vmatpush3.bf16.msra.mxu0 %v1237_v28 }
 0x94c   :  { %v768_v32 = vpop.f32.mrb[20].mxu0 }
 0x94d   :  { %v786_v33 = vpack.c.bf16 %v768_v32, %v768_v32  ;;  %v1162_v34 = vpop.f32.mrb[21].mxu0 }
 0x94e   :  { %v771_v35 = vpop.f32.mrb[22].mxu0 }
 0x94f   :  { %v1163_v36 = vpop.f32.mrb[23].mxu0  ;;  %1177 = vmatmul.mubr.msk.bf16.vlgmr.msra.gmra.mrb[24].mxu0 %vm828_vm4, %v786_v33 }
 0xa22   :  { %v866_v26 = vpop.f32.mrb[24].mxu0 }
 0xa23   :  { %v867_v27 = vadd.f32 %v1013_v25, %v866_v26  ;;  %v1178_v31 = vpop.f32.mrb[25].mxu0 }
 0xa24   :  { %v869_v38 = vpop.f32.mrb[26].mxu0 }
 0xa25   :  { %v872_v39 = vmax.f32 %v867_v27, 0.0  ;;  %v1179_v40 = vpop.f32.mrb[27].mxu0 }
 0xa27   :  { %v881_v41 = vpack.c.bf16 %v872_v39, %v872_v39 }
 0xa29   :  { %1189 = vmatmul.mubr.msk.bf16.vlgmr.msra.gmra.mrb[24].mxu1 %vm405_vm3, %v881_v41 }
 0xafc   :  { %v948_v43 = vpop.f32.mrb[24].mxu1 }
 0xafd   :  { %v949_v44 = vadd.f32 %v1021_v42, %v948_v43  ;;  %v1190_v45 = vpop.f32.mrb[25].mxu1 }
 0xafe   :  { %v951_v0 = vpop.f32.mrb[26].mxu1 }
 0xaff   :  { %954 = vst [vmem:[#allocation7] sm:$0x3] %v949_v44  ;;  %v1191_v46 = vpop.f32.mrb[27].mxu1 }
 0xb00   :  { %1297 = shalt.err (!%p1294_p6)
}
 0xb01   :  { %s1298_s13 = scalar_lea.hbm %s1490_s2, 32 }
 0xb02   :  { %p1299_p7 = scmp.ne.s32.totalorder %s1490_s2, %s1298_s13  ;;  %p1302_p8 = scmp.lt.u32.totalorder %s1298_s13, %s1490_s2 }
 0xb04   :  { %p1304_p9 = pnand %p1302_p8, %p1299_p7 }
 0xb06   :  { %1307 = shalt.err (!%p1304_p9)
}
 0xb07   :  { %964 = dma.vmem_to_hbm [thread:$0]  %s962_s9, 32, %s1490_s2, [#allocation4]  }
 0xb08   :  { %1312 = dma.done.wait [#allocation4], 32  }
 0xb09   :  { %1313 = vsyncadd [#allocation4], 4294967264 }
 0xb0a   :  { %968 = vsyncpa [#allocation3], 1 }
 0xb0b   :  { %969 = vsyncpa [#allocation6], 1 }
 0xb0c   :  { %970 = vsyncpa [#allocation4], 1 }

</bundles_post_ra>
